<compile_context>
chip_gen: v5e
topology: v5e:2x2
jax: 0.10.0
libtpu: 0.0.40
codegen_flags: <defaults>
</compile_context>

<pallas_src>
import functools

import jax
import jax.numpy as jnp
from jax.experimental import pallas as pl
from jax.experimental.pallas import tpu as pltpu

HIDDEN = 16
_SUBLANE = 8


def _pad_rows(d):
    return ((d + _SUBLANE - 1) // _SUBLANE) * _SUBLANE


def _h_prediction_kernel(x_ref, p_ref, out_ref, *, input_dim):
    d_pad = _pad_rows(input_dim)

    # Ref-level, sublane-aligned slices of the packed parameter slab.
    b1 = p_ref[pl.ds(d_pad + 0, 1), :]            # (1, 16)
    w2_row = p_ref[pl.ds(d_pad + 1, 1), :]        # (1, 16)  == torch w2^T
    b2 = p_ref[pl.ds(d_pad + 2, 1), :][:, 0:1]    # (1, 1)

    x = x_ref[...]                                # (B, D) f32

    if input_dim <= _SUBLANE:
        # Layer 1 on the VPU: unrolled exact-f32 broadcast multiply-accumulate
        # over the D rows of w1 (MXU would be <0.1% utilized here and the
        # f32-emulation passes + drain latency would dominate the kernel).
        h = jnp.broadcast_to(b1, (x.shape[0], HIDDEN))        # start from bias
        for d in range(input_dim):
            w1_row = p_ref[pl.ds(d, 1), :]        # (1, 16) ref-level row load
            h = h + x[:, d:d + 1] * w1_row        # (B,1)*(1,16) -> (B,16)
    else:
        # Fallback for larger input_dim: MXU matmul, 3-pass f32 emulation.
        w1 = p_ref[pl.ds(0, input_dim), :]        # (D, 16)
        h = jnp.dot(x, w1,
                    preferred_element_type=jnp.float32,
                    precision=jax.lax.Precision.HIGH) + b1
    h = jnp.maximum(h, 0.0)                       # ReLU on the VPU, (B, 16)

    # Layer 2: VPU multiply + lane reduction (degenerate N=1 stays off MXU).
    y = jnp.sum(h * w2_row, axis=-1, keepdims=True) + b2      # (B, 1)

    out_ref[...] = jnp.tanh(y).astype(out_ref.dtype)          # tanh on the EUP


def pack_params(w1, b1, w2, b2):
    """Pack layer params into one sublane-aligned (pad(D)+8, 16) f32 slab.

    Layout (d_pad = ceil(D/8)*8):
      rows [0, D)          : w1 stored as (in, out)  (torch layer_1.weight^T)
      rows [D, d_pad)      : zero padding
      row  d_pad           : b1
      row  d_pad + 1       : w2^T   (torch layer_2.weight^T, as a row)
      row  d_pad + 2, col 0: b2
      remaining rows       : zero padding (keeps the slab a whole tile count)
    """
    w1 = jnp.asarray(w1, jnp.float32)
    b1 = jnp.asarray(b1, jnp.float32).reshape(1, -1)
    w2 = jnp.asarray(w2, jnp.float32)
    b2 = jnp.asarray(b2, jnp.float32)
    assert w1.ndim == 2 and w1.shape[1] == HIDDEN, (
        "w1 must be (input_dim, 16) — torch layer_1.weight transposed")
    assert b1.shape == (1, HIDDEN), "b1 must have 16 elements"
    assert w2.shape == (HIDDEN, 1), (
        "w2 must be (16, 1) — torch layer_2.weight transposed")
    assert b2.size == 1, "b2 must be a scalar"

    d = w1.shape[0]
    d_pad = _pad_rows(d)
    slab = jnp.zeros((d_pad + _SUBLANE, HIDDEN), jnp.float32)
    slab = slab.at[:d, :].set(w1)
    slab = slab.at[d_pad, :].set(b1[0])
    slab = slab.at[d_pad + 1, :].set(w2[:, 0])
    slab = slab.at[d_pad + 2, 0].set(b2.reshape(()))
    return slab


def h_prediction_forward(x, params):
    """x: (B, D) f32; params: packed slab from pack_params()."""
    B, input_dim = x.shape
    assert params.shape == (_pad_rows(input_dim) + _SUBLANE, HIDDEN), (
        "params slab does not match x's input_dim — use pack_params()")
    kernel = functools.partial(_h_prediction_kernel, input_dim=input_dim)

    flops = 2 * B * input_dim * HIDDEN + 4 * B * HIDDEN       # l1 MACs + bias/relu + l2
    bytes_accessed = 4 * (x.size + params.size + B)

    return pl.pallas_call(
        kernel,
        out_shape=jax.ShapeDtypeStruct((B, 1), jnp.float32),
        # Gridless call: whole arrays resident in VMEM, no pipeline machinery.
        in_specs=[
            pl.BlockSpec(memory_space=pltpu.MemorySpace.VMEM),
            pl.BlockSpec(memory_space=pltpu.MemorySpace.VMEM),
        ],
        out_specs=pl.BlockSpec(memory_space=pltpu.MemorySpace.VMEM),
        cost_estimate=pl.CostEstimate(flops=flops,
                                      transcendentals=B,
                                      bytes_accessed=bytes_accessed),
    )(x, params)
    # TODO(synk): if B ever scales to many thousands of rows, switch to a
    # batch-tiled grid with dimension_semantics=("parallel",) (uses v7x's two
    # TensorCores), size the batch block against v7x's 64 MiB VMEM, and emit a
    # lane-dense output (last dim a multiple of 128) instead of (B, 1).


def init_params(key, input_dim, hidden=HIDDEN):
    """Deterministic synthetic init (PyTorch nn.Linear-style uniform bounds)."""
    k1, k2, k3, k4 = jax.random.split(key, 4)
    bound1 = 1.0 / jnp.sqrt(jnp.float32(input_dim))
    bound2 = 1.0 / jnp.sqrt(jnp.float32(hidden))
    # stored as (in, out) — i.e. transpose of torch's (out, in) weight matrix
    w1 = jax.random.uniform(k1, (input_dim, hidden), jnp.float32, -bound1, bound1)
    b1 = jax.random.uniform(k2, (1, hidden), jnp.float32, -bound1, bound1)
    w2 = jax.random.uniform(k3, (hidden, 1), jnp.float32, -bound2, bound2)
    b2 = jax.random.uniform(k4, (1, 1), jnp.float32, -bound2, bound2)
    return w1, b1, w2, b2


if __name__ == "__main__":
    key = jax.random.PRNGKey(0)
    k_x, k_p = jax.random.split(key)

    # MountainCar: small state(+action) feature vector; pick input_dim=4.
    # Amortize fixed overhead by stacking all candidate evaluations: batch=8.
    batch, input_dim = 8, 4
    x = jax.random.normal(k_x, (batch, input_dim), jnp.float32)
    w1, b1, w2, b2 = init_params(k_p, input_dim)

    params = pack_params(w1, b1, w2, b2)   # pack once -> one DMA per forward
    out = h_prediction_forward(x, params)
    out = jax.block_until_ready(out)

    # reference check in plain JAX
    h_ref = jnp.maximum(
        jnp.dot(x, w1, precision=jax.lax.Precision.HIGHEST) + b1, 0.0)
    ref = jnp.tanh(
        jnp.dot(h_ref, w2, precision=jax.lax.Precision.HIGHEST) + b2)
    assert out.shape == (batch, 1)
    assert jnp.allclose(out, ref, atol=1e-5, rtol=1e-5)

    print("KERNEL_OK")
</pallas_src>

<mosaic_0001>
module attributes {stable_mosaic.version = 11 : i64} {
  func.func @_h_prediction_kernel(%arg0: memref<8x4xf32, #tpu.memory_space<vmem>>, %arg1: memref<16x16xf32, #tpu.memory_space<vmem>>, %arg2: memref<8x1xf32, #tpu.memory_space<vmem>>) attributes {dimension_semantics = [], scalar_prefetch = 0 : i64, scratch_operands = 0 : i64, tpu.core_type = #tpu.core_type<tc>} {
    %c8 = arith.constant 8 : index
    %c0 = arith.constant 0 : index
    %0 = vector.load %arg1[%c8, %c0] : memref<16x16xf32, #tpu.memory_space<vmem>>, vector<1x16xf32>
    %c9 = arith.constant 9 : index
    %c0_0 = arith.constant 0 : index
    %1 = vector.load %arg1[%c9, %c0_0] : memref<16x16xf32, #tpu.memory_space<vmem>>, vector<1x16xf32>
    %c10 = arith.constant 10 : index
    %c0_1 = arith.constant 0 : index
    %2 = vector.load %arg1[%c10, %c0_1] : memref<16x16xf32, #tpu.memory_space<vmem>>, vector<1x16xf32>
    %3 = vector.extract_strided_slice %2 {offsets = [0, 0], sizes = [1, 1], strides = [1, 1]} : vector<1x16xf32> to vector<1x1xf32>
    %c0_2 = arith.constant 0 : index
    %c0_3 = arith.constant 0 : index
    %4 = vector.load %arg0[%c0_2, %c0_3] : memref<8x4xf32, #tpu.memory_space<vmem>>, vector<8x4xf32>
    %5 = vector.shape_cast %0 : vector<1x16xf32> to vector<1x16xf32>
    %6 = vector.broadcast %5 : vector<1x16xf32> to vector<8x16xf32>
    %c0_4 = arith.constant 0 : index
    %c0_5 = arith.constant 0 : index
    %7 = vector.load %arg1[%c0_4, %c0_5] : memref<16x16xf32, #tpu.memory_space<vmem>>, vector<1x16xf32>
    %8 = vector.extract_strided_slice %4 {offsets = [0, 0], sizes = [8, 1], strides = [1, 1]} : vector<8x4xf32> to vector<8x1xf32>
    %9 = vector.broadcast %8 : vector<8x1xf32> to vector<8x16xf32>
    %10 = vector.broadcast %7 : vector<1x16xf32> to vector<8x16xf32>
    %11 = arith.mulf %9, %10 : vector<8x16xf32>
    %12 = arith.addf %6, %11 : vector<8x16xf32>
    %c1 = arith.constant 1 : index
    %c0_6 = arith.constant 0 : index
    %13 = vector.load %arg1[%c1, %c0_6] : memref<16x16xf32, #tpu.memory_space<vmem>>, vector<1x16xf32>
    %14 = vector.extract_strided_slice %4 {offsets = [0, 1], sizes = [8, 1], strides = [1, 1]} : vector<8x4xf32> to vector<8x1xf32>
    %15 = vector.broadcast %14 : vector<8x1xf32> to vector<8x16xf32>
    %16 = vector.broadcast %13 : vector<1x16xf32> to vector<8x16xf32>
    %17 = arith.mulf %15, %16 : vector<8x16xf32>
    %18 = arith.addf %12, %17 : vector<8x16xf32>
    %c2 = arith.constant 2 : index
    %c0_7 = arith.constant 0 : index
    %19 = vector.load %arg1[%c2, %c0_7] : memref<16x16xf32, #tpu.memory_space<vmem>>, vector<1x16xf32>
    %20 = vector.extract_strided_slice %4 {offsets = [0, 2], sizes = [8, 1], strides = [1, 1]} : vector<8x4xf32> to vector<8x1xf32>
    %21 = vector.broadcast %20 : vector<8x1xf32> to vector<8x16xf32>
    %22 = vector.broadcast %19 : vector<1x16xf32> to vector<8x16xf32>
    %23 = arith.mulf %21, %22 : vector<8x16xf32>
    %24 = arith.addf %18, %23 : vector<8x16xf32>
    %c3 = arith.constant 3 : index
    %c0_8 = arith.constant 0 : index
    %25 = vector.load %arg1[%c3, %c0_8] : memref<16x16xf32, #tpu.memory_space<vmem>>, vector<1x16xf32>
    %26 = vector.extract_strided_slice %4 {offsets = [0, 3], sizes = [8, 1], strides = [1, 1]} : vector<8x4xf32> to vector<8x1xf32>
    %27 = vector.broadcast %26 : vector<8x1xf32> to vector<8x16xf32>
    %28 = vector.broadcast %25 : vector<1x16xf32> to vector<8x16xf32>
    %29 = arith.mulf %27, %28 : vector<8x16xf32>
    %30 = arith.addf %24, %29 : vector<8x16xf32>
    %cst = arith.constant 0.000000e+00 : f32
    %31 = vector.broadcast %cst : f32 to vector<8x16xf32>
    %32 = arith.maximumf %30, %31 : vector<8x16xf32>
    %33 = vector.broadcast %1 : vector<1x16xf32> to vector<8x16xf32>
    %34 = arith.mulf %32, %33 : vector<8x16xf32>
    %cst_9 = arith.constant dense<0.000000e+00> : vector<8xf32>
    %35 = vector.multi_reduction <add>, %34, %cst_9 [1] : vector<8x16xf32> to vector<8xf32>
    %36 = vector.shape_cast %35 : vector<8xf32> to vector<8x1xf32>
    %37 = vector.broadcast %3 : vector<1x1xf32> to vector<8x1xf32>
    %38 = arith.addf %36, %37 : vector<8x1xf32>
    %39 = math.tanh %38 : vector<8x1xf32>
    %c0_10 = arith.constant 0 : index
    %c0_11 = arith.constant 0 : index
    %40 = vector.load %arg2[%c0_10, %c0_11] : memref<8x1xf32, #tpu.memory_space<vmem>>, vector<8x1xf32>
    tpu.vector_store %arg2[%c0_10, %c0_11], %39 {strides = array<i32>} : memref<8x1xf32, #tpu.memory_space<vmem>>, vector<8x1xf32>,
    return
  }
}

</mosaic_0001>

<bundles_post_ra>
// kernel: tpu_custom_call.1
= control target key start
LH: loop header
LB: loop body
LE: loop exit
PB: predicated region body
PF: predicated region fallthrough
CT: control target
= control target key end

     0   :  { %7 = vsyncpa [#allocation3], 0  ;;  %s129_s12 = smov [#allocation2]   ;;  %s130_s14 = smov 128   ;;  %s160_s0 = inlined_call_operand.vmem [shape: f32[8,4], index: 0, kind: input, shape index: {}]   ;;  %s161_s1 = inlined_call_operand.hbm [shape: f32[16,16], index: 1, kind: input, shape index: {}]   ;;  %s162_s2 = inlined_call_operand.vmem [shape: f32[8,1], index: 2, kind: output, shape index: {}]  }
   0x1   :  { %s14_s11 = sshll.u32 %s161_s1, 4  ;;  %s16_s13 = sshll.u32 %s129_s12, 4  ;;  %s15_s11 = int_to_ptr.hbm [resolvable:$true] %s14_s11  ;;  %s17_s13 = int_to_ptr.vmem [resolvable:$true] %s16_s13 }
   0x2   :  { %s131_s15 = smov 8  }
   0x3   :  { %22 = dma.hbm_to_vmem [thread:$0]  %s15_s11, 256, %s17_s13, [#allocation3], %s130_s14, %s130_s14, %s131_s15  }
   0x4   :  { %127 = dma.done.wait [#allocation3], 256  }
   0x5   :  { %128 = vsyncadd [#allocation3], 4294967040  ;;  %v132_v0 = vmov 0   ;;  %v133_v1 = vmov 2   ;;  %v30_v2 = vld [vmem:[%s160_s0] sm:$0xff]  ;;  %v134_v3 = vmov 1  }
   0x6   :  { %89 = vset.pattern.permute.xlu0 %v132_v0  ;;  %91 = vset.pattern.permute.xlu1 %v133_v1  ;;  %v135_v4 = vmov 3   ;;  %v94_v7 = vld [vmem:[#allocation2] ss:$0 sm:$0xff]  ;;  %v95_v8 = vld [vmem:[#allocation2 + $0x8] ss:$0 sm:$0xff]  ;;  %vm68_vm0 = vcmask 130048  }
   0x7   :  { %35 = vperm.xlu0 %89, %v30_v2   ;;  %51 = vperm.xlu1 %91, %v30_v2   ;;  %v97_v10 = vld [vmem:[#allocation2 + $0x1] ss:$0 sm:$0xff]  ;;  %v96_v11 = vld [vmem:[#allocation2 + $0x2] ss:$0 sm:$0xff]  ;;  %v98_v12 = vld [vmem:[#allocation2 + $0x3] ss:$0 sm:$0xff] }
   0x8   :  { %v99_v22 = vld [vmem:[#allocation2 + $0x9] ss:$0 sm:$0xff]  ;;  %v100_v26 = vld [vmem:[#allocation2 + $0xa] ss:$0 sm:$0xff]  ;;  %vm75_vm1 = vcmask 7168  }
   0xf   :  { %90 = vset.pattern.permute.xlu0 %v134_v3  ;;  %92 = vset.pattern.permute.xlu1 %v135_v4 }
  0x10   :  { %43 = vperm.xlu0 %90, %v30_v2   ;;  %59 = vperm.xlu1 %92, %v30_v2  }
  0x18   :  { %93 = vset.pattern.permute.xlu0 %v135_v4 }
  0x79   :  { %v36_v5 = vpop.permute.xlu0 %35  ;;  %v52_v6 = vpop.permute.xlu1 %51 }
  0x7a   :  { %v39_v9 = vmul.f32 %v94_v7, %v36_v5  ;;  %v55_v17 = vmul.f32 %v96_v11, %v52_v6 }
  0x7c   :  { %v40_v15 = vadd.f32 %v95_v8, %v39_v9 }
  0x82   :  { %v44_v13 = vpop.permute.xlu0 %43  ;;  %v60_v14 = vpop.permute.xlu1 %59 }
  0x83   :  { %v47_v16 = vmul.f32 %v97_v10, %v44_v13  ;;  %v63_v19 = vmul.f32 %v98_v12, %v60_v14 }
  0x85   :  { %v48_v18 = vadd.f32 %v47_v16, %v40_v15 }
  0x87   :  { %v56_v20 = vadd.f32 %v55_v17, %v48_v18 }
  0x89   :  { %v64_v21 = vadd.f32 %v63_v19, %v56_v20 }
  0x8b   :  { %v65_v23 = vmax.f32 %v64_v21, 0.0 }
  0x8d   :  { %v67_v24 = vmul.f32 %v99_v22, %v65_v23 }
  0x8f   :  { %v69_v25 = vsel %vm68_vm0, %v67_v24, 0.0 }
  0x90   :  { %70 = vadd.xlane.f32.xlu2 %v69_v25 }
 0x103   :  { %v71_v27 = vpop.xlane.xlu2 %70 }
 0x104   :  { %v73_v28 = vadd.f32 %v100_v26, %v71_v27 }
 0x106   :  { %101 = vtanh.f32 %v73_v28 }
 0x10c   :  { %v102_v29 = vpop.eup %101 }
 0x10d   :  { %76 = vst.msk [vmem:[%s162_s2] sm:$0xff] %vm75_vm1, %v102_v29 }
 0x10e   :  { %81 = vsyncpa [#allocation3], 1 }

</bundles_post_ra>
